<compile_context>
chip_gen: v7x
topology: tpu7x:2x2x1
jax: 0.10.0
libtpu: 0.0.40
codegen_flags: <defaults>
</compile_context>

<pallas_src>
import jax
import jax.numpy as jnp
from jax.experimental import pallas as pl
from jax.experimental.pallas import tpu as pltpu

NODE_NUM = 10
N_STATES = 7 + NODE_NUM * 4          # 47
IN_DIM = N_STATES + 1                # 48
H1, H2, OUT = 64, 32, 1

# >=2048 rows amortizes per-grid-step overhead on v5e/v6e; v7x's faster HBM
# prefers 4096-8192.  Sweep per chip; VMEM is never the constraint here.
DEFAULT_TILE_B = 4096
# Only force a >=2-step grid (v7x megacore) when each half still amortizes
# the per-step overhead.
_MEGACORE_SPLIT_MIN_B = 256


def _critic_kernel(x_ref, w1_ref, b1_ref, w2_ref, b2_ref, w3_ref, b3_ref, o_ref):
    # fc1 + relu  (MXU matmul, f32 accumulation; bias-add / relu in f32).
    h1 = jnp.dot(x_ref[...], w1_ref[...], preferred_element_type=jnp.float32)
    h1 = jnp.maximum(h1 + b1_ref[...], 0.0)
    # fc2 + relu  (weights are VMEM-resident and already f32 -> no per-step casts).
    h2 = jnp.dot(h1, w2_ref[...], preferred_element_type=jnp.float32)
    h2 = jnp.maximum(h2 + b2_ref[...], 0.0)
    # out layer (N=1): contract w3 (1, 32) against h2 (tile, 32) along the
    # hidden dim with batch on the lane axis -> lane-dense (1, tile) row.
    v = jnp.einsum("oh,bh->ob", w3_ref[...], h2,
                   preferred_element_type=jnp.float32)
    o_ref[...] = (v + b3_ref[...]).reshape(o_ref.shape).astype(o_ref.dtype)


def _round_up(n, m):
    return ((n + m - 1) // m) * m


def critic_forward(x, params, *, tile_b=DEFAULT_TILE_B):
    """x: (B, IN_DIM) float32 (or caller-supplied bfloat16) -> (B, 1) float32.

    x is streamed exactly as supplied: no wrapper-side astype / jnp.pad passes
    (both would add a full extra HBM read+write to a bandwidth-bound kernel).
    Pass bf16 x only if it already lives in HBM as bf16.
    """
    w1, b1, w2, b2, w3, b3 = params
    B = x.shape[0]
    assert x.shape[1] == IN_DIM

    if x.dtype == jnp.bfloat16:
        w1 = w1.astype(jnp.bfloat16)      # one-time 6 KiB; bf16 x bf16, f32 acc
        row_align = 32                    # bf16 packs 16 sublanes per vreg
    else:
        x = x.astype(jnp.float32)
        w1 = w1.astype(jnp.float32)
        row_align = 8
    # All other parameters stay f32 and VMEM-resident (DMA'd from HBM once).
    w3_row = w3.reshape(1, H2).astype(jnp.float32)
    b1 = b1.reshape(1, H1).astype(jnp.float32)
    b2 = b2.reshape(1, H2).astype(jnp.float32)
    b3 = b3.reshape(1, OUT).astype(jnp.float32)

    # Batch tile.  No jnp.pad: if B % tile != 0 the last grid step reads a
    # partial x block (overhang rows compute garbage, sliced off below).
    tile = min(tile_b, _round_up(max(B, 1), row_align))
    tile = _round_up(tile, row_align)
    if pl.cdiv(B, tile) == 1 and B >= _MEGACORE_SPLIT_MIN_B:
        # Guarantee >=2 grid steps so ("parallel",) can shard across v7x's two
        # TensorCores; harmless on single-TC v5e/v6e.
        tile = _round_up((B + 1) // 2, row_align)
    num_tiles = pl.cdiv(B, tile)

    def resident(shape):
        # Constant index_map -> weight/bias block stays resident in VMEM.
        return pl.BlockSpec(shape, lambda i: (0, 0))

    flops = 2 * B * (IN_DIM * H1 + H1 * H2 + H2 * OUT)
    bytes_accessed = (
        B * (IN_DIM * jnp.dtype(x.dtype).itemsize + 4)
        + 4 * (IN_DIM * H1 + H1 * H2 + H2 + H1 + H2 + OUT))

    out = pl.pallas_call(
        _critic_kernel,
        # Lane-dense output slab: one (1, tile) row per grid step.  The block
        # covers the full last two dims of the slab, so any tile size that is
        # a multiple of row_align is legal and writes are unmasked.
        out_shape=jax.ShapeDtypeStruct((num_tiles, 1, tile), jnp.float32),
        grid=(num_tiles,),
        in_specs=[
            pl.BlockSpec((tile, IN_DIM), lambda i: (i, 0)),   # x: streamed per tile
            resident((IN_DIM, H1)),                           # w1
            resident((1, H1)),                                # b1
            resident((H1, H2)),                               # w2
            resident((1, H2)),                                # b2
            resident((1, H2)),                                # w3 (stored as a row)
            resident((1, OUT)),                               # b3
        ],
        out_specs=pl.BlockSpec((1, 1, tile), lambda i: (i, 0, 0)),
        compiler_params=pltpu.CompilerParams(
            dimension_semantics=("parallel",),                # megacore on v7x
        ),
        cost_estimate=pl.CostEstimate(
            flops=flops, transcendentals=0, bytes_accessed=bytes_accessed),
    )(x, w1, b1, w2, b2, w3_row, b3)

    # (num_tiles, 1, tile) row-major flatten is exactly batch order; drop the
    # overhang rows of the last (partial) tile.
    return out.reshape(num_tiles * tile, 1)[:B]


def _xavier_uniform(key, fan_in, fan_out):
    # Matches nn.init.xavier_uniform_ (gain=1) on a (fan_out, fan_in) weight;
    # we directly materialize the transposed (fan_in, fan_out) matrix.
    bound = jnp.sqrt(6.0 / (fan_in + fan_out))
    return jax.random.uniform(
        key, (fan_in, fan_out), dtype=jnp.float32, minval=-bound, maxval=bound
    )


def init_critic_params(key):
    k1, k2, k3 = jax.random.split(key, 3)
    w1 = _xavier_uniform(k1, IN_DIM, H1)
    b1 = jnp.zeros((1, H1), dtype=jnp.float32)
    w2 = _xavier_uniform(k2, H1, H2)
    b2 = jnp.zeros((1, H2), dtype=jnp.float32)
    w3 = _xavier_uniform(k3, H2, OUT)
    b3 = jnp.zeros((1, OUT), dtype=jnp.float32)
    return (w1, b1, w2, b2, w3, b3)


def critic_reference(x, params):
    """Pure-JAX reference of the PyTorch forward pass."""
    w1, b1, w2, b2, w3, b3 = params
    h1 = jnp.maximum(x @ w1 + b1, 0.0)
    h2 = jnp.maximum(h1 @ w2 + b2, 0.0)
    return h2 @ w3 + b3


if __name__ == "__main__":
    key = jax.random.PRNGKey(0)
    k_x, k_p = jax.random.split(key)
    params = init_critic_params(k_p)

    # 1) Small, single-tile batch.
    B = 8
    x = jax.random.normal(k_x, (B, IN_DIM), dtype=jnp.float32)
    value = jax.block_until_ready(critic_forward(x, params))
    ref = critic_reference(x, params)
    assert value.shape == (B, OUT)
    assert jnp.allclose(value, ref, atol=1e-5, rtol=1e-5), "f32 mismatch (B=8)"

    # 2) Multi-tile grid with a ragged tail (300 rows, 128-row tiles): the last
    #    tile is a partial block; no wrapper-side padding of x.
    B2 = 300
    x2 = jax.random.normal(k_x, (B2, IN_DIM), dtype=jnp.float32)
    value2 = jax.block_until_ready(critic_forward(x2, params, tile_b=128))
    ref2 = critic_reference(x2, params)
    assert value2.shape == (B2, OUT)
    assert jnp.allclose(value2, ref2, atol=1e-5, rtol=1e-5), "f32 mismatch (B=300)"

    # 3) Default tile: 300 rows would collapse to one step, so the wrapper
    #    splits it into two ~152-row steps (v7x megacore path).
    value3 = jax.block_until_ready(critic_forward(x2, params))
    assert value3.shape == (B2, OUT)
    assert jnp.allclose(value3, ref2, atol=1e-5, rtol=1e-5), "f32 mismatch (split)"

    # 4) Caller-supplied bf16 x (only worthwhile when x already lives as bf16);
    #    weights other than w1 stay f32 -> looser tolerance on x/w1 quantization.
    x2_bf16 = x2.astype(jnp.bfloat16)
    value_bf16 = jax.block_until_ready(critic_forward(x2_bf16, params, tile_b=128))
    assert value_bf16.shape == (B2, OUT)
    assert jnp.allclose(value_bf16, ref2, atol=5e-2, rtol=5e-2), "bf16 mismatch"

    print("KERNEL_OK")
</pallas_src>

<mosaic_0001>
module attributes {stable_mosaic.version = 11 : i64} {
  func.func @_critic_kernel(%arg0: i32, %arg1: memref<8x48xf32, #tpu.memory_space<vmem>>, %arg2: memref<48x64xf32, #tpu.memory_space<vmem>>, %arg3: memref<1x64xf32, #tpu.memory_space<vmem>>, %arg4: memref<64x32xf32, #tpu.memory_space<vmem>>, %arg5: memref<1x32xf32, #tpu.memory_space<vmem>>, %arg6: memref<1x32xf32, #tpu.memory_space<vmem>>, %arg7: memref<1x1xf32, #tpu.memory_space<vmem>>, %arg8: memref<1x1x8xf32, #tpu.memory_space<vmem>>) attributes {dimension_semantics = [#tpu.dimension_semantics<parallel>], iteration_bounds = array<i64: 1>, scalar_prefetch = 0 : i64, scratch_operands = 0 : i64, tpu.core_type = #tpu.core_type<tc>, window_params = [{transform_indices = @transform_0, window_bounds = array<i64: 8, 48>}, {pipeline_mode = #tpu.pipeline_mode<synchronous>, transform_indices = @transform_1, window_bounds = array<i64: 48, 64>}, {pipeline_mode = #tpu.pipeline_mode<synchronous>, transform_indices = @transform_2, window_bounds = array<i64: 1, 64>}, {pipeline_mode = #tpu.pipeline_mode<synchronous>, transform_indices = @transform_3, window_bounds = array<i64: 64, 32>}, {pipeline_mode = #tpu.pipeline_mode<synchronous>, transform_indices = @transform_4, window_bounds = array<i64: 1, 32>}, {pipeline_mode = #tpu.pipeline_mode<synchronous>, transform_indices = @transform_5, window_bounds = array<i64: 1, 32>}, {pipeline_mode = #tpu.pipeline_mode<synchronous>, transform_indices = @transform_6, window_bounds = array<i64: 1, 1>}, {transform_indices = @transform_7, window_bounds = array<i64: 1, 1, 8>}]} {
    %c0 = arith.constant 0 : index
    %c0_0 = arith.constant 0 : index
    %0 = vector.load %arg1[%c0, %c0_0] : memref<8x48xf32, #tpu.memory_space<vmem>>, vector<8x48xf32>
    %c0_1 = arith.constant 0 : index
    %c0_2 = arith.constant 0 : index
    %1 = vector.load %arg2[%c0_1, %c0_2] : memref<48x64xf32, #tpu.memory_space<vmem>>, vector<48x64xf32>
    %cst = arith.constant dense<0.000000e+00> : vector<8x64xf32>
    %2 = tpu.matmul %0, %1, %cst {dimension_numbers = #tpu.dot_dimension_numbers<[1], [0], [0], [1], [0, 0, 1, 1], [], []>} : vector<8x48xf32>, vector<48x64xf32>, vector<8x64xf32> -> vector<8x64xf32>
    %c0_3 = arith.constant 0 : index
    %c0_4 = arith.constant 0 : index
    %3 = vector.load %arg3[%c0_3, %c0_4] : memref<1x64xf32, #tpu.memory_space<vmem>>, vector<1x64xf32>
    %4 = vector.broadcast %3 : vector<1x64xf32> to vector<8x64xf32>
    %5 = arith.addf %2, %4 : vector<8x64xf32>
    %cst_5 = arith.constant 0.000000e+00 : f32
    %6 = vector.broadcast %cst_5 : f32 to vector<8x64xf32>
    %7 = arith.maximumf %5, %6 : vector<8x64xf32>
    %c0_6 = arith.constant 0 : index
    %c0_7 = arith.constant 0 : index
    %8 = vector.load %arg4[%c0_6, %c0_7] : memref<64x32xf32, #tpu.memory_space<vmem>>, vector<64x32xf32>
    %cst_8 = arith.constant dense<0.000000e+00> : vector<8x32xf32>
    %9 = tpu.matmul %7, %8, %cst_8 {dimension_numbers = #tpu.dot_dimension_numbers<[1], [0], [0], [1], [0, 0, 1, 1], [], []>} : vector<8x64xf32>, vector<64x32xf32>, vector<8x32xf32> -> vector<8x32xf32>
    %c0_9 = arith.constant 0 : index
    %c0_10 = arith.constant 0 : index
    %10 = vector.load %arg5[%c0_9, %c0_10] : memref<1x32xf32, #tpu.memory_space<vmem>>, vector<1x32xf32>
    %11 = vector.broadcast %10 : vector<1x32xf32> to vector<8x32xf32>
    %12 = arith.addf %9, %11 : vector<8x32xf32>
    %cst_11 = arith.constant 0.000000e+00 : f32
    %13 = vector.broadcast %cst_11 : f32 to vector<8x32xf32>
    %14 = arith.maximumf %12, %13 : vector<8x32xf32>
    %c0_12 = arith.constant 0 : index
    %c0_13 = arith.constant 0 : index
    %15 = vector.load %arg6[%c0_12, %c0_13] : memref<1x32xf32, #tpu.memory_space<vmem>>, vector<1x32xf32>
    "tpu.trace_start"() <{level = 10 : i32, message = "oh,bh->ob"}> : () -> ()
    %cst_14 = arith.constant dense<0.000000e+00> : vector<1x8xf32>
    %16 = tpu.matmul %15, %14, %cst_14 {dimension_numbers = #tpu.dot_dimension_numbers<[1], [1], [0], [0], [0, 0, 1, 0], [], []>} : vector<1x32xf32>, vector<8x32xf32>, vector<1x8xf32> -> vector<1x8xf32>
    "tpu.trace_stop"() : () -> ()
    %c0_15 = arith.constant 0 : index
    %c0_16 = arith.constant 0 : index
    %17 = vector.load %arg7[%c0_15, %c0_16] : memref<1x1xf32, #tpu.memory_space<vmem>>, vector<1x1xf32>
    %18 = vector.broadcast %17 : vector<1x1xf32> to vector<1x8xf32>
    %19 = arith.addf %16, %18 : vector<1x8xf32>
    %20 = vector.shape_cast %19 : vector<1x8xf32> to vector<1x1x8xf32>
    %c0_17 = arith.constant 0 : index
    %c0_18 = arith.constant 0 : index
    %c0_19 = arith.constant 0 : index
    %21 = vector.load %arg8[%c0_17, %c0_18, %c0_19] : memref<1x1x8xf32, #tpu.memory_space<vmem>>, vector<1x1x8xf32>
    tpu.vector_store %arg8[%c0_17, %c0_18, %c0_19], %20 {strides = array<i32>} : memref<1x1x8xf32, #tpu.memory_space<vmem>>, vector<1x1x8xf32>,
    return
  }
  func.func @transform_0(%arg0: i32) -> (i32, i32) {
    %c0_i32 = arith.constant 0 : i32
    %c0_i32_0 = arith.constant 0 : i32
    return %arg0, %c0_i32 : i32, i32
  }
  func.func @transform_1(%arg0: i32) -> (i32, i32) {
    %c0_i32 = arith.constant 0 : i32
    %c0_i32_0 = arith.constant 0 : i32
    %c0_i32_1 = arith.constant 0 : i32
    return %c0_i32, %c0_i32_0 : i32, i32
  }
  func.func @transform_2(%arg0: i32) -> (i32, i32) {
    %c0_i32 = arith.constant 0 : i32
    %c0_i32_0 = arith.constant 0 : i32
    %c0_i32_1 = arith.constant 0 : i32
    return %c0_i32, %c0_i32_0 : i32, i32
  }
  func.func @transform_3(%arg0: i32) -> (i32, i32) {
    %c0_i32 = arith.constant 0 : i32
    %c0_i32_0 = arith.constant 0 : i32
    %c0_i32_1 = arith.constant 0 : i32
    return %c0_i32, %c0_i32_0 : i32, i32
  }
  func.func @transform_4(%arg0: i32) -> (i32, i32) {
    %c0_i32 = arith.constant 0 : i32
    %c0_i32_0 = arith.constant 0 : i32
    %c0_i32_1 = arith.constant 0 : i32
    return %c0_i32, %c0_i32_0 : i32, i32
  }
  func.func @transform_5(%arg0: i32) -> (i32, i32) {
    %c0_i32 = arith.constant 0 : i32
    %c0_i32_0 = arith.constant 0 : i32
    %c0_i32_1 = arith.constant 0 : i32
    return %c0_i32, %c0_i32_0 : i32, i32
  }
  func.func @transform_6(%arg0: i32) -> (i32, i32) {
    %c0_i32 = arith.constant 0 : i32
    %c0_i32_0 = arith.constant 0 : i32
    %c0_i32_1 = arith.constant 0 : i32
    return %c0_i32, %c0_i32_0 : i32, i32
  }
  func.func @transform_7(%arg0: i32) -> (i32, i32, i32) {
    %c0_i32 = arith.constant 0 : i32
    %c0_i32_0 = arith.constant 0 : i32
    %c0_i32_1 = arith.constant 0 : i32
    return %arg0, %c0_i32, %c0_i32_0 : i32, i32, i32
  }
}

</mosaic_0001>

<bundles_post_ra>
// kernel: tpu_custom_call.1
= control target key start
LH: loop header
LB: loop body
LE: loop exit
PB: predicated region body
PF: predicated region fallthrough
CT: control target
= control target key end

     0   :  { %s543_s0 = inlined_call_operand.vmem [shape: f32[8,48], index: 0, kind: input, shape index: {}]   ;;  %s544_s1 = inlined_call_operand.vmem [shape: f32[48,64], index: 1, kind: input, shape index: {}]   ;;  %s545_s2 = inlined_call_operand.vmem [shape: f32[1,64], index: 2, kind: input, shape index: {}]   ;;  %s546_s3 = inlined_call_operand.vmem [shape: f32[64,32], index: 3, kind: input, shape index: {}]   ;;  %s547_s4 = inlined_call_operand.vmem [shape: f32[1,32], index: 4, kind: input, shape index: {}]   ;;  %s548_s5 = inlined_call_operand.vmem [shape: f32[1,32], index: 5, kind: input, shape index: {}]   ;;  %s549_s6 = inlined_call_operand.<no memory space> [shape: f32[1,1], index: 6, kind: input, shape index: {}]   ;;  %s550_s7 = inlined_call_operand.hbm [shape: f32[1,1,8], index: 7, kind: output, shape index: {}]  }
   0x1   :  { %v12_v0 = vstv %s549_s6 }
   0x2   :  { %13 = vst [vmem:[#allocation2] sm:$0x1] %v12_v0 }
   0x3   :  { %v30_v1 = vld [vmem:[%s544_s1] sm:$0xff]  ;;  %v31_v2 = vld [vmem:[%s544_s1 + $0x8] sm:$0xff]  ;;  %v32_v3 = vld [vmem:[%s544_s1 + $0x10] sm:$0xff]  ;;  %v426_v4 = vmov 0.0|0.0   ;;  %vm427_vm0 = vmmov 0   ;;  %v428_v7 = vmov 0.0  }
   0x4   :  { %375 = vmatprep.subr.bf16.mxu0 %v426_v4  ;;  %v376_v5 = vpack.c.bf16 %v31_v2, %v30_v1  ;;  %v33_v6 = vld [vmem:[%s544_s1 + $0x18] sm:$0xff]  ;;  %348 = vmatprep.mubr.msk.f32.mxu0 %vm427_vm0, %v428_v7  ;;  %v118_v8 = vld [vmem:[%s546_s3] sm:$0xff]  ;;  %v119_v9 = vld [vmem:[%s546_s3 + $0x8] sm:$0xff] }
   0x5   :  { %384 = vmatprep.subr.bf16.mxu1 %v426_v4  ;;  %367 = vmatprep.mubr.msk.f32.mxu1 %vm427_vm0, %v428_v7  ;;  %v379_v10 = vpack.c.bf16 %v33_v6, %v32_v3  ;;  %v385_v11 = vpack.c.bf16 %v119_v9, %v118_v8  ;;  %v120_v12 = vld [vmem:[%s546_s3 + $0x10] sm:$0xff]  ;;  %v121_v13 = vld [vmem:[%s546_s3 + $0x18] sm:$0xff]  ;;  %v34_v14 = vld [vmem:[%s544_s1 + $0x20] sm:$0xff] }
   0x6   :  { %377 = vmatpush3.bf16.msra.mxu0 %v376_v5  ;;  %v35_v15 = vld [vmem:[%s544_s1 + $0x28] sm:$0xff] }
   0x7   :  { %378 = vmatprep.subr.bf16.mxu0 %v426_v4 }
   0x8   :  { %14 = vsyncpa [#allocation4], 0  ;;  %386 = vmatpush3.bf16.msra.mxu1 %v385_v11  ;;  %v388_v16 = vpack.c.bf16 %v121_v13, %v120_v12  ;;  %v122_v17 = vld [vmem:[%s546_s3 + $0x20] sm:$0xff]  ;;  %v123_v18 = vld [vmem:[%s546_s3 + $0x28] sm:$0xff]  ;;  %v382_v19 = vpack.c.bf16 %v35_v15, %v34_v14  ;;  %vm43_vm1 = vcmask 392192   ;;  %vm133_vm2 = vcmask 523264  }
   0x9   :  { %387 = vmatprep.subr.bf16.mxu1 %v426_v4  ;;  %v391_v20 = vpack.c.bf16 %v123_v18, %v122_v17  ;;  %v29_v21 = vld [vmem:[%s543_s0] sm:$0xff]  ;;  %v124_v22 = vld [vmem:[%s546_s3 + $0x30] sm:$0xff]  ;;  %v125_v23 = vld [vmem:[%s546_s3 + $0x38] sm:$0xff]  ;;  %v429_v31 = vmov 0   ;;  %vm219_vm3 = vcmask 261120   ;;  %v215_v38 = vlaneseq  ;;  %s430_s6 = smov [#allocation3]  }
   0xa   :  { %380 = vmatpush3.bf16.msra.mxu0 %v379_v10  ;;  %v394_v24 = vpack.c.bf16 %v125_v23, %v124_v22  ;;  %v312_v25 = vld [vmem:[%s545_s2] ss:$0 sm:$0xff]  ;;  %401 = vset.pattern.permute.xlu0 %v429_v31  ;;  %s304_s11 = sshll.u32 %s430_s6, 4  ;;  %vm296_vm4 = vcmask 57344   ;;  %s305_s11 = int_to_ptr.vmem [resolvable:$true] %s304_s11 }
   0xb   :  { %381 = vmatprep.subr.bf16.mxu0 %v426_v4  ;;  %v209_v30 = vld [vmem:[#allocation2] sm:$0x1]  ;;  %v216_v39 = vshrl.u32 %v215_v38, 7  ;;  %s406_s12 = scalar_lea.vmem %s305_s11, 32  ;;  %p407_p1 = scmp.lt.s32.totalorder %s305_s11, %s305_s11 }
   0xc   :  { %389 = vmatpush3.bf16.msra.mxu1 %v388_v16  ;;  %212 = vperm.xlu0 %401, %v209_v30   ;;  %v314_v32 = vld [vmem:[%s547_s4] ss:$0 sm:$0xff]  ;;  %s402_s4 = scalar_lea.vmem %s305_s11, 16 }
   0xd   :  { %390 = vmatprep.subr.bf16.mxu1 %v426_v4  ;;  %v208_v37 = vld [vmem:[%s548_s5] sm:$0x1]  ;;  %v217_v40 = vsub.s32 0, %v216_v39  ;;  %p403_p0 = scmp.ne.s32.totalorder %s305_s11, %s402_s4  ;;  %p408_p2 = scmp.lt.s32.totalorder %s406_s12, %s402_s4 }
   0xe   :  { %383 = vmatpush3.bf16.msra.mxu0 %v382_v19 }
   0xf   :  { %370 = vmatprep.subr.mxu0 %v428_v7  ;;  %p409_p3 = por %p408_p2, %p407_p1 }
  0x10   :  { %392 = vmatpush3.bf16.msra.mxu1 %v391_v20 }
  0x11   :  { %349 = vmatmul.mubr.msk.f32.vlgmr.msra.gmra.mrb[0].mxu0 %vm43_vm1, %v29_v21  ;;  %393 = vmatprep.subr.bf16.mxu1 %v426_v4  ;;  %p410_p4 = pnand %p409_p3, %p403_p0 }
  0x12   :  { %372 = vmatprep.mubr.msk.f32.mxu0 %vm427_vm0, %v428_v7 }
  0x14   :  { %395 = vmatpush3.bf16.msra.mxu1 %v394_v24 }
  0x8b   :  { %v213_v41 = vpop.permute.xlu0 %212 }
  0x8c   :  { %v218_v42 = vrot.slane %v213_v41, %v217_v40 }
  0xe4   :  { %v113_v26 = vpop.f32.mrb[0].mxu0 }
  0xe5   :  { %v114_v27 = vadd.f32 %v312_v25, %v113_v26  ;;  %v350_v28 = vpop.f32.mrb[1].mxu0 }
  0xe7   :  { %v117_v29 = vmax.f32 %v114_v27, 0.0 }
  0xe9   :  { %368 = vmatmul.mubr.msk.f32.vlgmr.msra.gmra.mrb[0].mxu1 %vm133_vm2, %v117_v29 }
 0x1bc   :  { %v203_v33 = vpop.f32.mrb[0].mxu1 }
 0x1bd   :  { %v204_v34 = vadd.f32 %v314_v32, %v203_v33  ;;  %v369_v35 = vpop.f32.mrb[1].mxu1 }
 0x1bf   :  { %v207_v36 = vmax.f32 %v204_v34, 0.0 }
 0x1c1   :  { %371 = vmatpush3.xpose.msk.msra.mxu0 %vm219_vm3, %v207_v36 }
 0x1c4   :  { %373 = vmatmul.mubr.msk.f32.vlgmr.msra.gmra.mrb[2].mxu0 %vm219_vm3, %v208_v37 }
 0x297   :  { %v292_v43 = vpop.f32.mrb[2].mxu0 }
 0x298   :  { %v293_v44 = vadd.f32 %v292_v43, %v218_v42  ;;  %v374_v45 = vpop.f32.mrb[3].mxu0 }
 0x29a   :  { %297 = vst.msk [vmem:[#allocation3] sm:$0x1] %vm296_vm4, %v293_v44 }
 0x29b   :  { %413 = shalt.err (!%p410_p4)
}
 0x29c   :  { %s414_s14 = scalar_lea.hbm %s550_s7, 16 }
 0x29d   :  { %p415_p5 = scmp.ne.s32.totalorder %s550_s7, %s414_s14  ;;  %p418_p6 = scmp.lt.u32.totalorder %s414_s14, %s550_s7 }
 0x29f   :  { %p420_p7 = pnand %p418_p6, %p415_p5 }
 0x2a1   :  { %423 = shalt.err (!%p420_p7)
}
 0x2a2   :  { %307 = dma.vmem_to_hbm [thread:$0]  %s305_s11, 16, %s550_s7, [#allocation4]  }
 0x2a3   :  { %424 = dma.done.wait [#allocation4], 16  }
 0x2a4   :  { %425 = vsyncadd [#allocation4], 4294967280 }
 0x2a5   :  { %311 = vsyncpa [#allocation4], 1 }

</bundles_post_ra>
